<compile_context>
chip_gen: v7x
topology: tpu7x:2x2x1
jax: 0.10.0
libtpu: 0.0.40
codegen_flags: <defaults>
</compile_context>

<pallas_src>
import functools

import numpy as np

import jax
import jax.numpy as jnp
from jax.experimental import pallas as pl
from jax.experimental.pallas import tpu as pltpu


# ----------------------------------------------------------------------------
# Pallas kernel: per-side channel reduce (VPU) + per-side resize matmul (MXU)
# + weighted fusion + scalar bias, all in one invocation.
# ----------------------------------------------------------------------------
def _side_head_kernel(*refs, side_meta, n_kmats, compute_dtype):
    # refs layout:
    #   refs[0]                     scale_ref  SMEM f32[sum_i C_i]   (w_i * eff_conv_w_i[c])
    #   refs[1]                     bias_ref   SMEM f32[1]           (sum_i w_i * eff_b_i)
    #   refs[2 : 2+S]               x_i        VMEM (N, C_i, H_i*W_i)
    #   refs[2+S : 2+S+n_kmats]     kmat_j     VMEM (H_i*W_i, P)     (low-res sides only)
    #   refs[-1]                    out        VMEM f32 (N, P)
    n_sides = len(side_meta)
    scale_ref = refs[0]
    bias_ref = refs[1]
    x_refs = refs[2:2 + n_sides]
    k_refs = refs[2 + n_sides:2 + n_sides + n_kmats]
    out_ref = refs[2 + n_sides + n_kmats]

    acc = None
    c_off = 0
    for i, (C, _HW, k_idx) in enumerate(side_meta):
        # Channel reduce with folded (fusion * conv * BN) weights, in f32.
        y = scale_ref[c_off] * x_refs[i][:, 0, :]
        for c in range(1, C):
            y = y + scale_ref[c_off + c] * x_refs[i][:, c, :]
        c_off += C

        if k_idx is None:
            # Side already at output resolution: identity resize, stay in f32.
            term = y
        else:
            # De-duplicated bilinear kron matrix; MXU matmul, f32 accumulation.
            term = jnp.dot(
                y.astype(compute_dtype),
                k_refs[k_idx][...],
                preferred_element_type=jnp.float32,
            )
        acc = term if acc is None else acc + term

    out_ref[...] = acc + bias_ref[0]


# ----------------------------------------------------------------------------
# Static (parameter-independent) build-time constants -- pure NumPy.
# ----------------------------------------------------------------------------
def bilinear_matrix_np(out_size, in_size):
    """1-D interpolation matrix matching F.interpolate(mode='bilinear',
    align_corners=False, antialias=False) along one axis."""
    if out_size == in_size:
        return np.eye(out_size, dtype=np.float32)
    dst = np.arange(out_size, dtype=np.float64)
    scale = in_size / out_size
    src = (dst + 0.5) * scale - 0.5
    src = np.maximum(src, 0.0)                       # PyTorch clamps negative coords
    x0 = np.minimum(np.floor(src).astype(np.int64), in_size - 1)
    x1 = np.minimum(x0 + 1, in_size - 1)
    lam = (src - x0).astype(np.float32)
    m = np.zeros((out_size, in_size), np.float32)
    rows = np.arange(out_size)
    np.add.at(m, (rows, x0), 1.0 - lam)
    np.add.at(m, (rows, x1), lam)
    return m


# ----------------------------------------------------------------------------
# Parameter glue: fusion-weight normalization and BatchNorm folding.
# ----------------------------------------------------------------------------
def fast_normalize(w, eps=1e-4):
    # EfficientDet-style fast normalized fusion: relu(w) / (sum(relu(w)) + eps)
    w = jax.nn.relu(w)
    return w / (jnp.sum(w) + eps)


def init_side_head_params(key, side_in_channels):
    """Synthetic init mirroring SideHead.__init__: per side a 1x1 Conv2d(c->1)
    followed by BatchNorm2d, folded to (eff_w[c], eff_b) for inference."""
    # TODO(synk): training-mode BatchNorm (batch statistics + running-stat update)
    # is not implemented; this folds inference-mode BN into the conv.
    params = []
    bn_eps = 1e-5
    for c in side_in_channels:
        key, k1, k2, k3 = jax.random.split(key, 4)
        conv_w = 0.1 * jax.random.normal(k1, (c,), jnp.float32)   # (out=1, in=c, 1, 1)
        gamma = 1.0 + 0.05 * jax.random.normal(k2, (), jnp.float32)
        beta = 0.05 * jax.random.normal(k3, (), jnp.float32)
        running_mean = jnp.float32(0.0)
        running_var = jnp.float32(1.0)
        s = gamma / jnp.sqrt(running_var + bn_eps)
        params.append((conv_w * s, beta - running_mean * s))
    fusion_w = jnp.ones((len(side_in_channels),), jnp.float32)
    return params, fusion_w


# ----------------------------------------------------------------------------
# Forward builder: bakes the static interpolation matrices + kernel closure.
# ----------------------------------------------------------------------------
def make_side_head_forward(side_shapes, out_hw, kmat_dtype=jnp.bfloat16):
    """side_shapes: list of (C_i, H_i, W_i); out_hw = (H0, W0) (side-0 res)."""
    H0, W0 = out_hw
    P = H0 * W0

    side_meta = []
    kmats = []
    for (C, Hi, Wi) in side_shapes:
        if (Hi, Wi) == (H0, W0):
            side_meta.append((C, Hi * Wi, None))           # identity resize
        else:
            rh = bilinear_matrix_np(H0, Hi)                # (H0, Hi)
            rw = bilinear_matrix_np(W0, Wi)                # (W0, Wi)
            kr = np.kron(rh.T, rw.T)                       # (Hi*Wi, H0*W0), de-dup'd
            side_meta.append((C, Hi * Wi, len(kmats)))
            kmats.append(jnp.asarray(kr, kmat_dtype))
    side_meta = tuple(side_meta)
    n_sides = len(side_meta)
    n_kmats = len(kmats)
    total_c = sum(m[0] for m in side_meta)
    kmat_itemsize = np.dtype(kmat_dtype).itemsize

    kernel = functools.partial(
        _side_head_kernel,
        side_meta=side_meta,
        n_kmats=n_kmats,
        compute_dtype=kmat_dtype,
    )

    def forward(cs, params, fusion_w):
        assert len(cs) == n_sides
        N = cs[0].shape[0]
        w = fast_normalize(fusion_w)

        # Per-channel folded weights (w_i * eff_conv_w_i) -> SMEM vector.
        scales = jnp.concatenate(
            [(w[i] * params[i][0]).reshape(-1) for i in range(n_sides)]
        ).astype(jnp.float32)
        # Bias collapses to a scalar (bilinear rows sum to 1).
        bias = jnp.sum(jnp.stack([w[i] * params[i][1] for i in range(n_sides)]))
        bias = jnp.reshape(bias, (1,)).astype(jnp.float32)

        # Flatten each side's spatial dims (minor-dim merge: layout-trivial).
        x_list = [
            cs[i].reshape(N, cs[i].shape[1], cs[i].shape[2] * cs[i].shape[3])
            for i in range(n_sides)
        ]

        # Advisory cost so XLA can overlap this micro-kernel with neighbors.
        flops = sum(2 * N * C * HW for (C, HW, _) in side_meta)
        flops += sum(2 * N * HW * P for (_, HW, k) in side_meta if k is not None)
        flops += N * P
        bytes_accessed = (
            sum(N * C * HW * cs[i].dtype.itemsize
                for i, (C, HW, _) in enumerate(side_meta))
            + sum(int(k.size) * kmat_itemsize for k in kmats)
            + (total_c + 1) * 4
            + N * P * 4
        )

        out = pl.pallas_call(
            kernel,
            out_shape=jax.ShapeDtypeStruct((N, P), jnp.float32),
            in_specs=(
                [pl.BlockSpec(memory_space=pltpu.MemorySpace.SMEM)] * 2
                + [pl.BlockSpec(memory_space=pltpu.MemorySpace.VMEM)]
                * (n_sides + n_kmats)
            ),
            out_specs=pl.BlockSpec(memory_space=pltpu.MemorySpace.VMEM),
            cost_estimate=pl.CostEstimate(
                flops=flops, transcendentals=0, bytes_accessed=bytes_accessed
            ),
        )(scales, bias, *x_list, *kmats)

        return out.reshape(N, 1, H0, W0)

    return forward


# ----------------------------------------------------------------------------
# Pure-JAX reference with the module's original structure.
# ----------------------------------------------------------------------------
def side_head_reference(cs, params, fusion_w):
    N, _, H0, W0 = cs[0].shape
    w = fast_normalize(fusion_w)
    p = jnp.zeros((N, H0, W0), jnp.float32)
    for i, x in enumerate(cs):
        eff_w, eff_b = params[i]
        _, _, Hi, Wi = x.shape
        y = jnp.einsum("nchw,c->nhw", x, eff_w) + eff_b
        if (Hi, Wi) != (H0, W0):
            rh = jnp.asarray(bilinear_matrix_np(H0, Hi))
            rw = jnp.asarray(bilinear_matrix_np(W0, Wi))
            y = jnp.einsum("oh,nhw,kw->nok", rh, y, rw)
        p = p + w[i] * y
    return p[:, None, :, :]


if __name__ == "__main__":
    shapes = [(2, 4, 16, 16), (2, 8, 8, 8), (2, 16, 4, 4)]
    side_in_channels = [s[1] for s in shapes]

    key = jax.random.PRNGKey(0)
    key, *ks = jax.random.split(key, len(shapes) + 1)
    cs = [jax.random.normal(k, s, jnp.float32) for k, s in zip(ks, shapes)]

    params, fusion_w = init_side_head_params(jax.random.PRNGKey(1), side_in_channels)

    H0, W0 = shapes[0][2], shapes[0][3]
    side_shapes = [s[1:] for s in shapes]

    ref = side_head_reference(cs, params, fusion_w)

    # Exact f32 interpolation-matrix path.
    fwd_f32 = jax.jit(make_side_head_forward(side_shapes, (H0, W0), jnp.float32))
    out_f32 = jax.block_until_ready(fwd_f32(cs, params, fusion_w))
    assert out_f32.shape == (2, 1, H0, W0), out_f32.shape
    assert jnp.allclose(out_f32, ref, atol=1e-4, rtol=1e-4), "f32 mismatch vs reference"

    # bf16 interpolation-matrix path (half the Kmat bytes; valid on v5e/v6e/v7x).
    fwd_bf16 = jax.jit(make_side_head_forward(side_shapes, (H0, W0), jnp.bfloat16))
    out_bf16 = jax.block_until_ready(fwd_bf16(cs, params, fusion_w))
    assert jnp.allclose(out_bf16, ref, atol=2e-2, rtol=2e-2), "bf16 mismatch vs reference"

    print("KERNEL_OK")
</pallas_src>

<mosaic_0001>
module attributes {stable_mosaic.version = 11 : i64} {
  func.func @_side_head_kernel(%arg0: memref<28xf32, #tpu.memory_space<smem>>, %arg1: memref<1xf32, #tpu.memory_space<smem>>, %arg2: memref<2x4x256xf32, #tpu.memory_space<vmem>>, %arg3: memref<2x8x64xf32, #tpu.memory_space<vmem>>, %arg4: memref<2x16x16xf32, #tpu.memory_space<vmem>>, %arg5: memref<64x256xf32, #tpu.memory_space<vmem>>, %arg6: memref<16x256xf32, #tpu.memory_space<vmem>>, %arg7: memref<2x256xf32, #tpu.memory_space<vmem>>) attributes {dimension_semantics = [], scalar_prefetch = 0 : i64, scratch_operands = 0 : i64, tpu.core_type = #tpu.core_type<tc>} {
    %c0 = arith.constant 0 : index
    %0 = memref.load %arg0[%c0] : memref<28xf32, #tpu.memory_space<smem>>
    %c0_0 = arith.constant 0 : index
    %c0_1 = arith.constant 0 : index
    %c0_2 = arith.constant 0 : index
    %1 = vector.load %arg2[%c0_0, %c0_1, %c0_2] : memref<2x4x256xf32, #tpu.memory_space<vmem>>, vector<2x1x256xf32>
    %2 = vector.shape_cast %1 : vector<2x1x256xf32> to vector<2x256xf32>
    %3 = vector.broadcast %0 : f32 to vector<2x256xf32>
    %4 = arith.mulf %3, %2 : vector<2x256xf32>
    %c1 = arith.constant 1 : index
    %5 = memref.load %arg0[%c1] : memref<28xf32, #tpu.memory_space<smem>>
    %c0_3 = arith.constant 0 : index
    %c1_4 = arith.constant 1 : index
    %c0_5 = arith.constant 0 : index
    %6 = vector.load %arg2[%c0_3, %c1_4, %c0_5] : memref<2x4x256xf32, #tpu.memory_space<vmem>>, vector<2x1x256xf32>
    %7 = vector.shape_cast %6 : vector<2x1x256xf32> to vector<2x256xf32>
    %8 = vector.broadcast %5 : f32 to vector<2x256xf32>
    %9 = arith.mulf %8, %7 : vector<2x256xf32>
    %10 = arith.addf %4, %9 : vector<2x256xf32>
    %c2 = arith.constant 2 : index
    %11 = memref.load %arg0[%c2] : memref<28xf32, #tpu.memory_space<smem>>
    %c0_6 = arith.constant 0 : index
    %c2_7 = arith.constant 2 : index
    %c0_8 = arith.constant 0 : index
    %12 = vector.load %arg2[%c0_6, %c2_7, %c0_8] : memref<2x4x256xf32, #tpu.memory_space<vmem>>, vector<2x1x256xf32>
    %13 = vector.shape_cast %12 : vector<2x1x256xf32> to vector<2x256xf32>
    %14 = vector.broadcast %11 : f32 to vector<2x256xf32>
    %15 = arith.mulf %14, %13 : vector<2x256xf32>
    %16 = arith.addf %10, %15 : vector<2x256xf32>
    %c3 = arith.constant 3 : index
    %17 = memref.load %arg0[%c3] : memref<28xf32, #tpu.memory_space<smem>>
    %c0_9 = arith.constant 0 : index
    %c3_10 = arith.constant 3 : index
    %c0_11 = arith.constant 0 : index
    %18 = vector.load %arg2[%c0_9, %c3_10, %c0_11] : memref<2x4x256xf32, #tpu.memory_space<vmem>>, vector<2x1x256xf32>
    %19 = vector.shape_cast %18 : vector<2x1x256xf32> to vector<2x256xf32>
    %20 = vector.broadcast %17 : f32 to vector<2x256xf32>
    %21 = arith.mulf %20, %19 : vector<2x256xf32>
    %22 = arith.addf %16, %21 : vector<2x256xf32>
    %c4 = arith.constant 4 : index
    %23 = memref.load %arg0[%c4] : memref<28xf32, #tpu.memory_space<smem>>
    %c0_12 = arith.constant 0 : index
    %c0_13 = arith.constant 0 : index
    %c0_14 = arith.constant 0 : index
    %24 = vector.load %arg3[%c0_12, %c0_13, %c0_14] : memref<2x8x64xf32, #tpu.memory_space<vmem>>, vector<2x1x64xf32>
    %25 = vector.shape_cast %24 : vector<2x1x64xf32> to vector<2x64xf32>
    %26 = vector.broadcast %23 : f32 to vector<2x64xf32>
    %27 = arith.mulf %26, %25 : vector<2x64xf32>
    %c5 = arith.constant 5 : index
    %28 = memref.load %arg0[%c5] : memref<28xf32, #tpu.memory_space<smem>>
    %c0_15 = arith.constant 0 : index
    %c1_16 = arith.constant 1 : index
    %c0_17 = arith.constant 0 : index
    %29 = vector.load %arg3[%c0_15, %c1_16, %c0_17] : memref<2x8x64xf32, #tpu.memory_space<vmem>>, vector<2x1x64xf32>
    %30 = vector.shape_cast %29 : vector<2x1x64xf32> to vector<2x64xf32>
    %31 = vector.broadcast %28 : f32 to vector<2x64xf32>
    %32 = arith.mulf %31, %30 : vector<2x64xf32>
    %33 = arith.addf %27, %32 : vector<2x64xf32>
    %c6 = arith.constant 6 : index
    %34 = memref.load %arg0[%c6] : memref<28xf32, #tpu.memory_space<smem>>
    %c0_18 = arith.constant 0 : index
    %c2_19 = arith.constant 2 : index
    %c0_20 = arith.constant 0 : index
    %35 = vector.load %arg3[%c0_18, %c2_19, %c0_20] : memref<2x8x64xf32, #tpu.memory_space<vmem>>, vector<2x1x64xf32>
    %36 = vector.shape_cast %35 : vector<2x1x64xf32> to vector<2x64xf32>
    %37 = vector.broadcast %34 : f32 to vector<2x64xf32>
    %38 = arith.mulf %37, %36 : vector<2x64xf32>
    %39 = arith.addf %33, %38 : vector<2x64xf32>
    %c7 = arith.constant 7 : index
    %40 = memref.load %arg0[%c7] : memref<28xf32, #tpu.memory_space<smem>>
    %c0_21 = arith.constant 0 : index
    %c3_22 = arith.constant 3 : index
    %c0_23 = arith.constant 0 : index
    %41 = vector.load %arg3[%c0_21, %c3_22, %c0_23] : memref<2x8x64xf32, #tpu.memory_space<vmem>>, vector<2x1x64xf32>
    %42 = vector.shape_cast %41 : vector<2x1x64xf32> to vector<2x64xf32>
    %43 = vector.broadcast %40 : f32 to vector<2x64xf32>
    %44 = arith.mulf %43, %42 : vector<2x64xf32>
    %45 = arith.addf %39, %44 : vector<2x64xf32>
    %c8 = arith.constant 8 : index
    %46 = memref.load %arg0[%c8] : memref<28xf32, #tpu.memory_space<smem>>
    %c0_24 = arith.constant 0 : index
    %c4_25 = arith.constant 4 : index
    %c0_26 = arith.constant 0 : index
    %47 = vector.load %arg3[%c0_24, %c4_25, %c0_26] : memref<2x8x64xf32, #tpu.memory_space<vmem>>, vector<2x1x64xf32>
    %48 = vector.shape_cast %47 : vector<2x1x64xf32> to vector<2x64xf32>
    %49 = vector.broadcast %46 : f32 to vector<2x64xf32>
    %50 = arith.mulf %49, %48 : vector<2x64xf32>
    %51 = arith.addf %45, %50 : vector<2x64xf32>
    %c9 = arith.constant 9 : index
    %52 = memref.load %arg0[%c9] : memref<28xf32, #tpu.memory_space<smem>>
    %c0_27 = arith.constant 0 : index
    %c5_28 = arith.constant 5 : index
    %c0_29 = arith.constant 0 : index
    %53 = vector.load %arg3[%c0_27, %c5_28, %c0_29] : memref<2x8x64xf32, #tpu.memory_space<vmem>>, vector<2x1x64xf32>
    %54 = vector.shape_cast %53 : vector<2x1x64xf32> to vector<2x64xf32>
    %55 = vector.broadcast %52 : f32 to vector<2x64xf32>
    %56 = arith.mulf %55, %54 : vector<2x64xf32>
    %57 = arith.addf %51, %56 : vector<2x64xf32>
    %c10 = arith.constant 10 : index
    %58 = memref.load %arg0[%c10] : memref<28xf32, #tpu.memory_space<smem>>
    %c0_30 = arith.constant 0 : index
    %c6_31 = arith.constant 6 : index
    %c0_32 = arith.constant 0 : index
    %59 = vector.load %arg3[%c0_30, %c6_31, %c0_32] : memref<2x8x64xf32, #tpu.memory_space<vmem>>, vector<2x1x64xf32>
    %60 = vector.shape_cast %59 : vector<2x1x64xf32> to vector<2x64xf32>
    %61 = vector.broadcast %58 : f32 to vector<2x64xf32>
    %62 = arith.mulf %61, %60 : vector<2x64xf32>
    %63 = arith.addf %57, %62 : vector<2x64xf32>
    %c11 = arith.constant 11 : index
    %64 = memref.load %arg0[%c11] : memref<28xf32, #tpu.memory_space<smem>>
    %c0_33 = arith.constant 0 : index
    %c7_34 = arith.constant 7 : index
    %c0_35 = arith.constant 0 : index
    %65 = vector.load %arg3[%c0_33, %c7_34, %c0_35] : memref<2x8x64xf32, #tpu.memory_space<vmem>>, vector<2x1x64xf32>
    %66 = vector.shape_cast %65 : vector<2x1x64xf32> to vector<2x64xf32>
    %67 = vector.broadcast %64 : f32 to vector<2x64xf32>
    %68 = arith.mulf %67, %66 : vector<2x64xf32>
    %69 = arith.addf %63, %68 : vector<2x64xf32>
    %c0_36 = arith.constant 0 : index
    %c0_37 = arith.constant 0 : index
    %70 = vector.load %arg5[%c0_36, %c0_37] : memref<64x256xf32, #tpu.memory_space<vmem>>, vector<64x256xf32>
    %cst = arith.constant dense<0.000000e+00> : vector<2x256xf32>
    %71 = tpu.matmul %69, %70, %cst {dimension_numbers = #tpu.dot_dimension_numbers<[1], [0], [0], [1], [0, 0, 1, 1], [], []>} : vector<2x64xf32>, vector<64x256xf32>, vector<2x256xf32> -> vector<2x256xf32>
    %72 = arith.addf %22, %71 : vector<2x256xf32>
    %c12 = arith.constant 12 : index
    %73 = memref.load %arg0[%c12] : memref<28xf32, #tpu.memory_space<smem>>
    %c0_38 = arith.constant 0 : index
    %c0_39 = arith.constant 0 : index
    %c0_40 = arith.constant 0 : index
    %74 = vector.load %arg4[%c0_38, %c0_39, %c0_40] : memref<2x16x16xf32, #tpu.memory_space<vmem>>, vector<2x1x16xf32>
    %75 = vector.shape_cast %74 : vector<2x1x16xf32> to vector<2x16xf32>
    %76 = vector.broadcast %73 : f32 to vector<2x16xf32>
    %77 = arith.mulf %76, %75 : vector<2x16xf32>
    %c13 = arith.constant 13 : index
    %78 = memref.load %arg0[%c13] : memref<28xf32, #tpu.memory_space<smem>>
    %c0_41 = arith.constant 0 : index
    %c1_42 = arith.constant 1 : index
    %c0_43 = arith.constant 0 : index
    %79 = vector.load %arg4[%c0_41, %c1_42, %c0_43] : memref<2x16x16xf32, #tpu.memory_space<vmem>>, vector<2x1x16xf32>
    %80 = vector.shape_cast %79 : vector<2x1x16xf32> to vector<2x16xf32>
    %81 = vector.broadcast %78 : f32 to vector<2x16xf32>
    %82 = arith.mulf %81, %80 : vector<2x16xf32>
    %83 = arith.addf %77, %82 : vector<2x16xf32>
    %c14 = arith.constant 14 : index
    %84 = memref.load %arg0[%c14] : memref<28xf32, #tpu.memory_space<smem>>
    %c0_44 = arith.constant 0 : index
    %c2_45 = arith.constant 2 : index
    %c0_46 = arith.constant 0 : index
    %85 = vector.load %arg4[%c0_44, %c2_45, %c0_46] : memref<2x16x16xf32, #tpu.memory_space<vmem>>, vector<2x1x16xf32>
    %86 = vector.shape_cast %85 : vector<2x1x16xf32> to vector<2x16xf32>
    %87 = vector.broadcast %84 : f32 to vector<2x16xf32>
    %88 = arith.mulf %87, %86 : vector<2x16xf32>
    %89 = arith.addf %83, %88 : vector<2x16xf32>
    %c15 = arith.constant 15 : index
    %90 = memref.load %arg0[%c15] : memref<28xf32, #tpu.memory_space<smem>>
    %c0_47 = arith.constant 0 : index
    %c3_48 = arith.constant 3 : index
    %c0_49 = arith.constant 0 : index
    %91 = vector.load %arg4[%c0_47, %c3_48, %c0_49] : memref<2x16x16xf32, #tpu.memory_space<vmem>>, vector<2x1x16xf32>
    %92 = vector.shape_cast %91 : vector<2x1x16xf32> to vector<2x16xf32>
    %93 = vector.broadcast %90 : f32 to vector<2x16xf32>
    %94 = arith.mulf %93, %92 : vector<2x16xf32>
    %95 = arith.addf %89, %94 : vector<2x16xf32>
    %c16 = arith.constant 16 : index
    %96 = memref.load %arg0[%c16] : memref<28xf32, #tpu.memory_space<smem>>
    %c0_50 = arith.constant 0 : index
    %c4_51 = arith.constant 4 : index
    %c0_52 = arith.constant 0 : index
    %97 = vector.load %arg4[%c0_50, %c4_51, %c0_52] : memref<2x16x16xf32, #tpu.memory_space<vmem>>, vector<2x1x16xf32>
    %98 = vector.shape_cast %97 : vector<2x1x16xf32> to vector<2x16xf32>
    %99 = vector.broadcast %96 : f32 to vector<2x16xf32>
    %100 = arith.mulf %99, %98 : vector<2x16xf32>
    %101 = arith.addf %95, %100 : vector<2x16xf32>
    %c17 = arith.constant 17 : index
    %102 = memref.load %arg0[%c17] : memref<28xf32, #tpu.memory_space<smem>>
    %c0_53 = arith.constant 0 : index
    %c5_54 = arith.constant 5 : index
    %c0_55 = arith.constant 0 : index
    %103 = vector.load %arg4[%c0_53, %c5_54, %c0_55] : memref<2x16x16xf32, #tpu.memory_space<vmem>>, vector<2x1x16xf32>
    %104 = vector.shape_cast %103 : vector<2x1x16xf32> to vector<2x16xf32>
    %105 = vector.broadcast %102 : f32 to vector<2x16xf32>
    %106 = arith.mulf %105, %104 : vector<2x16xf32>
    %107 = arith.addf %101, %106 : vector<2x16xf32>
    %c18 = arith.constant 18 : index
    %108 = memref.load %arg0[%c18] : memref<28xf32, #tpu.memory_space<smem>>
    %c0_56 = arith.constant 0 : index
    %c6_57 = arith.constant 6 : index
    %c0_58 = arith.constant 0 : index
    %109 = vector.load %arg4[%c0_56, %c6_57, %c0_58] : memref<2x16x16xf32, #tpu.memory_space<vmem>>, vector<2x1x16xf32>
    %110 = vector.shape_cast %109 : vector<2x1x16xf32> to vector<2x16xf32>
    %111 = vector.broadcast %108 : f32 to vector<2x16xf32>
    %112 = arith.mulf %111, %110 : vector<2x16xf32>
    %113 = arith.addf %107, %112 : vector<2x16xf32>
    %c19 = arith.constant 19 : index
    %114 = memref.load %arg0[%c19] : memref<28xf32, #tpu.memory_space<smem>>
    %c0_59 = arith.constant 0 : index
    %c7_60 = arith.constant 7 : index
    %c0_61 = arith.constant 0 : index
    %115 = vector.load %arg4[%c0_59, %c7_60, %c0_61] : memref<2x16x16xf32, #tpu.memory_space<vmem>>, vector<2x1x16xf32>
    %116 = vector.shape_cast %115 : vector<2x1x16xf32> to vector<2x16xf32>
    %117 = vector.broadcast %114 : f32 to vector<2x16xf32>
    %118 = arith.mulf %117, %116 : vector<2x16xf32>
    %119 = arith.addf %113, %118 : vector<2x16xf32>
    %c20 = arith.constant 20 : index
    %120 = memref.load %arg0[%c20] : memref<28xf32, #tpu.memory_space<smem>>
    %c0_62 = arith.constant 0 : index
    %c8_63 = arith.constant 8 : index
    %c0_64 = arith.constant 0 : index
    %121 = vector.load %arg4[%c0_62, %c8_63, %c0_64] : memref<2x16x16xf32, #tpu.memory_space<vmem>>, vector<2x1x16xf32>
    %122 = vector.shape_cast %121 : vector<2x1x16xf32> to vector<2x16xf32>
    %123 = vector.broadcast %120 : f32 to vector<2x16xf32>
    %124 = arith.mulf %123, %122 : vector<2x16xf32>
    %125 = arith.addf %119, %124 : vector<2x16xf32>
    %c21 = arith.constant 21 : index
    %126 = memref.load %arg0[%c21] : memref<28xf32, #tpu.memory_space<smem>>
    %c0_65 = arith.constant 0 : index
    %c9_66 = arith.constant 9 : index
    %c0_67 = arith.constant 0 : index
    %127 = vector.load %arg4[%c0_65, %c9_66, %c0_67] : memref<2x16x16xf32, #tpu.memory_space<vmem>>, vector<2x1x16xf32>
    %128 = vector.shape_cast %127 : vector<2x1x16xf32> to vector<2x16xf32>
    %129 = vector.broadcast %126 : f32 to vector<2x16xf32>
    %130 = arith.mulf %129, %128 : vector<2x16xf32>
    %131 = arith.addf %125, %130 : vector<2x16xf32>
    %c22 = arith.constant 22 : index
    %132 = memref.load %arg0[%c22] : memref<28xf32, #tpu.memory_space<smem>>
    %c0_68 = arith.constant 0 : index
    %c10_69 = arith.constant 10 : index
    %c0_70 = arith.constant 0 : index
    %133 = vector.load %arg4[%c0_68, %c10_69, %c0_70] : memref<2x16x16xf32, #tpu.memory_space<vmem>>, vector<2x1x16xf32>
    %134 = vector.shape_cast %133 : vector<2x1x16xf32> to vector<2x16xf32>
    %135 = vector.broadcast %132 : f32 to vector<2x16xf32>
    %136 = arith.mulf %135, %134 : vector<2x16xf32>
    %137 = arith.addf %131, %136 : vector<2x16xf32>
    %c23 = arith.constant 23 : index
    %138 = memref.load %arg0[%c23] : memref<28xf32, #tpu.memory_space<smem>>
    %c0_71 = arith.constant 0 : index
    %c11_72 = arith.constant 11 : index
    %c0_73 = arith.constant 0 : index
    %139 = vector.load %arg4[%c0_71, %c11_72, %c0_73] : memref<2x16x16xf32, #tpu.memory_space<vmem>>, vector<2x1x16xf32>
    %140 = vector.shape_cast %139 : vector<2x1x16xf32> to vector<2x16xf32>
    %141 = vector.broadcast %138 : f32 to vector<2x16xf32>
    %142 = arith.mulf %141, %140 : vector<2x16xf32>
    %143 = arith.addf %137, %142 : vector<2x16xf32>
    %c24 = arith.constant 24 : index
    %144 = memref.load %arg0[%c24] : memref<28xf32, #tpu.memory_space<smem>>
    %c0_74 = arith.constant 0 : index
    %c12_75 = arith.constant 12 : index
    %c0_76 = arith.constant 0 : index
    %145 = vector.load %arg4[%c0_74, %c12_75, %c0_76] : memref<2x16x16xf32, #tpu.memory_space<vmem>>, vector<2x1x16xf32>
    %146 = vector.shape_cast %145 : vector<2x1x16xf32> to vector<2x16xf32>
    %147 = vector.broadcast %144 : f32 to vector<2x16xf32>
    %148 = arith.mulf %147, %146 : vector<2x16xf32>
    %149 = arith.addf %143, %148 : vector<2x16xf32>
    %c25 = arith.constant 25 : index
    %150 = memref.load %arg0[%c25] : memref<28xf32, #tpu.memory_space<smem>>
    %c0_77 = arith.constant 0 : index
    %c13_78 = arith.constant 13 : index
    %c0_79 = arith.constant 0 : index
    %151 = vector.load %arg4[%c0_77, %c13_78, %c0_79] : memref<2x16x16xf32, #tpu.memory_space<vmem>>, vector<2x1x16xf32>
    %152 = vector.shape_cast %151 : vector<2x1x16xf32> to vector<2x16xf32>
    %153 = vector.broadcast %150 : f32 to vector<2x16xf32>
    %154 = arith.mulf %153, %152 : vector<2x16xf32>
    %155 = arith.addf %149, %154 : vector<2x16xf32>
    %c26 = arith.constant 26 : index
    %156 = memref.load %arg0[%c26] : memref<28xf32, #tpu.memory_space<smem>>
    %c0_80 = arith.constant 0 : index
    %c14_81 = arith.constant 14 : index
    %c0_82 = arith.constant 0 : index
    %157 = vector.load %arg4[%c0_80, %c14_81, %c0_82] : memref<2x16x16xf32, #tpu.memory_space<vmem>>, vector<2x1x16xf32>
    %158 = vector.shape_cast %157 : vector<2x1x16xf32> to vector<2x16xf32>
    %159 = vector.broadcast %156 : f32 to vector<2x16xf32>
    %160 = arith.mulf %159, %158 : vector<2x16xf32>
    %161 = arith.addf %155, %160 : vector<2x16xf32>
    %c27 = arith.constant 27 : index
    %162 = memref.load %arg0[%c27] : memref<28xf32, #tpu.memory_space<smem>>
    %c0_83 = arith.constant 0 : index
    %c15_84 = arith.constant 15 : index
    %c0_85 = arith.constant 0 : index
    %163 = vector.load %arg4[%c0_83, %c15_84, %c0_85] : memref<2x16x16xf32, #tpu.memory_space<vmem>>, vector<2x1x16xf32>
    %164 = vector.shape_cast %163 : vector<2x1x16xf32> to vector<2x16xf32>
    %165 = vector.broadcast %162 : f32 to vector<2x16xf32>
    %166 = arith.mulf %165, %164 : vector<2x16xf32>
    %167 = arith.addf %161, %166 : vector<2x16xf32>
    %c0_86 = arith.constant 0 : index
    %c0_87 = arith.constant 0 : index
    %168 = vector.load %arg6[%c0_86, %c0_87] : memref<16x256xf32, #tpu.memory_space<vmem>>, vector<16x256xf32>
    %cst_88 = arith.constant dense<0.000000e+00> : vector<2x256xf32>
    %169 = tpu.matmul %167, %168, %cst_88 {dimension_numbers = #tpu.dot_dimension_numbers<[1], [0], [0], [1], [0, 0, 1, 1], [], []>} : vector<2x16xf32>, vector<16x256xf32>, vector<2x256xf32> -> vector<2x256xf32>
    %170 = arith.addf %72, %169 : vector<2x256xf32>
    %c0_89 = arith.constant 0 : index
    %171 = memref.load %arg1[%c0_89] : memref<1xf32, #tpu.memory_space<smem>>
    %172 = vector.broadcast %171 : f32 to vector<2x256xf32>
    %173 = arith.addf %170, %172 : vector<2x256xf32>
    %c0_90 = arith.constant 0 : index
    %c0_91 = arith.constant 0 : index
    %174 = vector.load %arg7[%c0_90, %c0_91] : memref<2x256xf32, #tpu.memory_space<vmem>>, vector<2x256xf32>
    tpu.vector_store %arg7[%c0_90, %c0_91], %173 {strides = array<i32>} : memref<2x256xf32, #tpu.memory_space<vmem>>, vector<2x256xf32>,
    return
  }
}

</mosaic_0001>

<bundles_post_ra>
// kernel: forward.1
= control target key start
LH: loop header
LB: loop body
LE: loop exit
PB: predicated region body
PF: predicated region fallthrough
CT: control target
= control target key end

     0   :  { %13 = vsyncpa [#allocation4], 0  ;;  %s949_s0 = inlined_call_operand.vmem [shape: f32[28], index: 0, kind: input, shape index: {}]   ;;  %s950_s1 = inlined_call_operand.<no memory space> [shape: f32[1], index: 1, kind: input, shape index: {}]   ;;  %s951_s2 = inlined_call_operand.vmem [shape: f32[2,4,256], index: 2, kind: input, shape index: {}]   ;;  %s952_s3 = inlined_call_operand.vmem [shape: f32[2,8,64], index: 3, kind: input, shape index: {}]   ;;  %s953_s4 = inlined_call_operand.vmem [shape: f32[2,16,16], index: 4, kind: input, shape index: {}]   ;;  %s954_s5 = inlined_call_operand.vmem [shape: f32[64,256], index: 5, kind: input, shape index: {}]   ;;  %s955_s6 = inlined_call_operand.vmem [shape: f32[16,256], index: 6, kind: input, shape index: {}]   ;;  %s956_s7 = inlined_call_operand.vmem [shape: f32[2,256], index: 7, kind: output, shape index: {}]  }
   0x1   :  { %s20_s26 = sshll.u32 %s949_s0, 4  ;;  %s21_s26 = int_to_ptr.vmem [resolvable:$true] %s20_s26 }
   0x2   :  { %s581_s27 = scalar_lea.vmem %s21_s26, 16  ;;  %p586_p1 = scmp.lt.s32.totalorder %s21_s26, %s21_s26 }
   0x3   :  { %p582_p0 = scmp.ne.s32.totalorder %s21_s26, %s581_s27  ;;  %p587_p2 = scmp.lt.s32.totalorder %s581_s27, %s581_s27 }
   0x5   :  { %p588_p3 = por %p587_p2, %p586_p1 }
   0x7   :  { %p589_p4 = pnand %p588_p3, %p582_p0 }
   0x9   :  { %592 = shalt.err (!%p589_p4)
}
   0xa   :  { %s595_s28 = smov [#allocation3]  }
   0xb   :  { %23 = dma.vmem_to_smem %s21_s26, 16, %s595_s28, [#allocation4]  }
   0xc   :  { %593 = dma.done.wait [#allocation4], 16  }
   0xd   :  { %594 = vsyncadd [#allocation4], 4294967280 }
   0xe   :  { %39 = sfence }
   0xf   :  { %v140_v0 = vld [vmem:[%s954_s5 + $0x8] sm:$0xff]  ;;  %v142_v1 = vld [vmem:[%s954_s5 + $0x18] sm:$0xff]  ;;  %v139_v2 = vld [vmem:[%s954_s5] sm:$0xff]  ;;  %s650_s11 = sld [smem:[#allocation3 + $0x4]]  ;;  %v596_v7 = vmov 0.0   ;;  %s661_s18 = sld [smem:[#allocation3 + $0x5]] }
  0x10   :  { %v558_v3 = vpack.c.bf16 %v142_v1, %v140_v0  ;;  %v141_v4 = vld [vmem:[%s954_s5 + $0x10] sm:$0xff]  ;;  %v144_v5 = vld [vmem:[%s954_s5 + $0x28] sm:$0xff]  ;;  %v146_v6 = vld [vmem:[%s954_s5 + $0x38] sm:$0xff]  ;;  %227 = vmatprep.mubr.f32.mxu0 %v596_v7  ;;  %464 = vmatprep.mubr.f32.mxu1 %v596_v7  ;;  %s672_s25 = sld [smem:[#allocation3 + $0x6]]  ;;  %s677_s28 = sld [smem:[#allocation3 + $0x7]]  ;;  %vm158_vm0 = vcmask 1041409  }
  0x11   :  { %v560_v8 = vpack.c.bf16 %v141_v4, %v139_v2  ;;  %v562_v9 = vpack.c.bf16 %v146_v6, %v144_v5  ;;  %v143_v10 = vld [vmem:[%s954_s5 + $0x20] sm:$0xff]  ;;  %v145_v11 = vld [vmem:[%s954_s5 + $0x30] sm:$0xff]  ;;  %v148_v12 = vld [vmem:[%s954_s5 + $0x48] sm:$0xff]  ;;  %s688_s12 = sld [smem:[#allocation3 + $0x8]]  ;;  %s699_s20 = sld [smem:[#allocation3 + $0x9]]  ;;  %vm160_vm1 = vcmask 523264  }
  0x12   :  { %559 = vmatprep.subr.bf16.mxu0 %v558_v3  ;;  %v150_v13 = vld [vmem:[%s954_s5 + $0x58] sm:$0xff]  ;;  %v564_v14 = vpack.c.bf16 %v145_v11, %v143_v10  ;;  %v147_v15 = vld [vmem:[%s954_s5 + $0x40] sm:$0xff]  ;;  %v149_v16 = vld [vmem:[%s954_s5 + $0x50] sm:$0xff]  ;;  %s741_s23 = sld [smem:[#allocation3 + $0xa]]  ;;  %s751_s29 = sld [smem:[#allocation3 + $0xb]]  ;;  %vm397_vm2 = vcmask 130048  }
  0x13   :  { %561 = vmatpush1.bf16.msra.mxu0 %v560_v8  ;;  %v152_v17 = vld [vmem:[%s954_s5 + $0x68] sm:$0xff]  ;;  %v566_v18 = vpack.c.bf16 %v150_v13, %v148_v12  ;;  %v154_v19 = vld [vmem:[%s954_s5 + $0x78] sm:$0xff]  ;;  %v151_v22 = vld [vmem:[%s954_s5 + $0x60] sm:$0xff]  ;;  %v568_v34 = vpack.c.bf16 %v149_v16, %v147_v15  ;;  %s759_s0 = sld [smem:[#allocation3 + $0xc]]  ;;  %s777_s19 = sld [smem:[#allocation3 + $0xf]] }
  0x14   :  { %563 = vmatprep.subr.bf16.mxu0 %v562_v9  ;;  %v390_v20 = vld [vmem:[%s955_s6 + $0x8] sm:$0xff]  ;;  %v392_v21 = vld [vmem:[%s955_s6 + $0x18] sm:$0xff]  ;;  %v78_v24 = vld [vmem:[%s952_s3] sm:$0x1]  ;;  %v570_v41 = vpack.c.bf16 %v154_v19, %v152_v17  ;;  %s789_s24 = sld [smem:[#allocation3 + $0x11]]  ;;  %s823_s17 = sld [smem:[#allocation3 + $0x14]] }
  0x15   :  { %v574_v23 = vpack.c.bf16 %v392_v21, %v390_v20  ;;  %v79_v25 = vld [vmem:[%s952_s3 + $0x8] sm:$0x1]  ;;  %v80_v26 = vstv %s650_s11  ;;  %v84_v27 = vld [vmem:[%s952_s3 + $0x1] sm:$0x1]  ;;  %v85_v30 = vld [vmem:[%s952_s3 + $0x9] sm:$0x1] }
  0x16   :  { %v81_v28 = vmul.f32 %v80_v26, %v78_v24  ;;  %v82_v29 = vmul.f32 %v80_v26, %v79_v25  ;;  %v86_v31 = vstv %s661_s18  ;;  %v92_v32 = vld [vmem:[%s952_s3 + $0x2] sm:$0x1]  ;;  %v93_v33 = vld [vmem:[%s952_s3 + $0xa] sm:$0x1]  ;;  %v153_v35 = vld [vmem:[%s954_s5 + $0x70] sm:$0xff]  ;;  %s780_s5 = sld [smem:[#allocation3 + $0x10]] }
  0x17   :  { %565 = vmatpush1.bf16.msra.mxu0 %v564_v14  ;;  %575 = vmatprep.subr.bf16.mxu1 %v574_v23  ;;  %v87_v36 = vmul.f32 %v86_v31, %v84_v27  ;;  %v88_v37 = vmul.f32 %v86_v31, %v85_v30  ;;  %v94_v38 = vstv %s672_s25  ;;  %v100_v39 = vld [vmem:[%s952_s3 + $0x3] sm:$0x1]  ;;  %v101_v40 = vld [vmem:[%s952_s3 + $0xb] sm:$0x1]  ;;  %v102_v44 = vstv %s677_s28  ;;  %s833_s22 = sld [smem:[#allocation3 + $0x15]]  ;;  %s843_s28 = sld [smem:[#allocation3 + $0x16]] }
  0x18   :  { %567 = vmatprep.subr.bf16.mxu0 %v566_v18  ;;  %v95_v42 = vmul.f32 %v94_v38, %v92_v32  ;;  %v96_v43 = vmul.f32 %v94_v38, %v93_v33  ;;  %v108_v45 = vld [vmem:[%s952_s3 + $0x4] sm:$0x1]  ;;  %v109_v46 = vld [vmem:[%s952_s3 + $0xc] sm:$0x1]  ;;  %v103_v49 = vmul.f32 %v102_v44, %v100_v39  ;;  %v104_v50 = vmul.f32 %v102_v44, %v101_v40  ;;  %v116_v53 = vld [vmem:[%s952_s3 + $0x5] sm:$0x1] }
  0x19   :  { %v89_v47 = vadd.f32 %v87_v36, %v81_v28  ;;  %v90_v48 = vadd.f32 %v88_v37, %v82_v29  ;;  %v572_v51 = vpack.c.bf16 %v153_v35, %v151_v22  ;;  %v110_v52 = vstv %s688_s12  ;;  %v117_v54 = vld [vmem:[%s952_s3 + $0xd] sm:$0x1]  ;;  %v389_v60 = vld [vmem:[%s955_s6] sm:$0xff]  ;;  %v391_v61 = vld [vmem:[%s955_s6 + $0x10] sm:$0xff]  ;;  %s769_s6 = sld [smem:[#allocation3 + $0xe]]  ;;  %s852_s12 = sld [smem:[#allocation3 + $0x17]] }
  0x1a   :  { %v118_v55 = vstv %s699_s20  ;;  %v111_v58 = vmul.f32 %v110_v52, %v108_v45  ;;  %v112_v59 = vmul.f32 %v110_v52, %v109_v46  ;;  %v576_v62 = vpack.c.bf16 %v391_v61, %v389_v60  ;;  %s761_s20 = sld [smem:[#allocation3 + $0xd]]  ;;  %v124_v3 = vld [vmem:[%s952_s3 + $0x6] sm:$0x1]  ;;  %v125_v4 = vld [vmem:[%s952_s3 + $0xe] sm:$0x1]  ;;  %s861_s14 = sld [smem:[#allocation3 + $0x18]] }
  0x1b   :  { %569 = vmatpush1.bf16.msra.mxu0 %v568_v34  ;;  %v97_v56 = vadd.f32 %v95_v42, %v89_v47  ;;  %v98_v57 = vadd.f32 %v96_v43, %v90_v48  ;;  %v119_v1 = vmul.f32 %v118_v55, %v116_v53  ;;  %v120_v2 = vmul.f32 %v118_v55, %v117_v54  ;;  %v132_v5 = vld [vmem:[%s952_s3 + $0x7] sm:$0x1]  ;;  %v133_v6 = vld [vmem:[%s952_s3 + $0xf] sm:$0x1]  ;;  %v264_v13 = vld [vmem:[%s953_s4] sm:$0x1] }
  0x1c   :  { %571 = vmatprep.subr.bf16.mxu0 %v570_v41  ;;  %577 = vmatpush1.bf16.msra.mxu1 %v576_v62  ;;  %v126_v9 = vstv %s741_s23  ;;  %v134_v12 = vstv %s751_s29  ;;  %v265_v14 = vld [vmem:[%s953_s4 + $0x10] sm:$0x1]  ;;  %v270_v19 = vld [vmem:[%s953_s4 + $0x1] sm:$0x1]  ;;  %s797_s29 = sld [smem:[#allocation3 + $0x12]]  ;;  %s870_s18 = sld [smem:[#allocation3 + $0x19]] }
  0x1d   :  { %v105_v63 = vadd.f32 %v103_v49, %v97_v56  ;;  %v106_v0 = vadd.f32 %v104_v50, %v98_v57  ;;  %v127_v10 = vmul.f32 %v126_v9, %v124_v3  ;;  %v128_v11 = vmul.f32 %v126_v9, %v125_v4  ;;  %v271_v20 = vld [vmem:[%s953_s4 + $0x11] sm:$0x1]  ;;  %v278_v23 = vld [vmem:[%s953_s4 + $0x2] sm:$0x1]  ;;  %v279_v24 = vld [vmem:[%s953_s4 + $0x12] sm:$0x1] }
  0x1e   :  { %v135_v17 = vmul.f32 %v134_v12, %v132_v5  ;;  %v136_v18 = vmul.f32 %v134_v12, %v133_v6  ;;  %v266_v21 = vstv %s759_s0  ;;  %v286_v29 = vld [vmem:[%s953_s4 + $0x3] sm:$0x1]  ;;  %v287_v30 = vld [vmem:[%s953_s4 + $0x13] sm:$0x1]  ;;  %s813_s0 = sld [smem:[#allocation3 + $0x13]]  ;;  %v288_v34 = vstv %s777_s19  ;;  %s879_s21 = sld [smem:[#allocation3 + $0x1a]] }
  0x1f   :  { %573 = vmatpush1.bf16.msra.mxu0 %v572_v51  ;;  %v113_v7 = vadd.f32 %v111_v58, %v105_v63  ;;  %v114_v8 = vadd.f32 %v112_v59, %v106_v0  ;;  %v267_v27 = vmul.f32 %v266_v21, %v264_v13  ;;  %v268_v28 = vmul.f32 %v266_v21, %v265_v14  ;;  %v294_v39 = vld [vmem:[%s953_s4 + $0x4] sm:$0x1]  ;;  %v295_v40 = vld [vmem:[%s953_s4 + $0x14] sm:$0x1]  ;;  %v302_v45 = vld [vmem:[%s953_s4 + $0x5] sm:$0x1] }
  0x20   :  { %v272_v22 = vstv %s761_s20  ;;  %v280_v33 = vstv %s769_s6  ;;  %v289_v43 = vmul.f32 %v288_v34, %v286_v29  ;;  %v290_v44 = vmul.f32 %v288_v34, %v287_v30  ;;  %v303_v48 = vld [vmem:[%s953_s4 + $0x15] sm:$0x1]  ;;  %v310_v55 = vld [vmem:[%s953_s4 + $0x6] sm:$0x1]  ;;  %s888_s26 = sld [smem:[#allocation3 + $0x1b]]  ;;  %s525_s16 = sld [smem:[#allocation3 + $0x2]] }
  0x21   :  { %v121_v15 = vadd.f32 %v119_v1, %v113_v7  ;;  %v122_v16 = vadd.f32 %v120_v2, %v114_v8  ;;  %v273_v31 = vmul.f32 %v272_v22, %v270_v19  ;;  %v274_v32 = vmul.f32 %v272_v22, %v271_v20  ;;  %v311_v56 = vld [vmem:[%s953_s4 + $0x16] sm:$0x1]  ;;  %v318_v62 = vld [vmem:[%s953_s4 + $0x7] sm:$0x1]  ;;  %v319_v63 = vld [vmem:[%s953_s4 + $0x17] sm:$0x1] }
  0x22   :  { %v281_v37 = vmul.f32 %v280_v33, %v278_v23  ;;  %v282_v38 = vmul.f32 %v280_v33, %v279_v24  ;;  %v296_v47 = vstv %s780_s5  ;;  %v304_v49 = vstv %s789_s24  ;;  %v326_v5 = vld [vmem:[%s953_s4 + $0x8] sm:$0x1]  ;;  %v327_v6 = vld [vmem:[%s953_s4 + $0x18] sm:$0x1]  ;;  %s528_s25 = sld [smem:[#allocation3 + $0x3]] }
  0x23   :  { %v129_v25 = vadd.f32 %v127_v10, %v121_v15  ;;  %v130_v26 = vadd.f32 %v128_v11, %v122_v16  ;;  %v275_v41 = vadd.f32 %v273_v31, %v267_v27  ;;  %v276_v42 = vadd.f32 %v274_v32, %v268_v28  ;;  %v334_v12 = vld [vmem:[%s953_s4 + $0x9] sm:$0x1]  ;;  %v335_v13 = vld [vmem:[%s953_s4 + $0x19] sm:$0x1]  ;;  %v342_v19 = vld [vmem:[%s953_s4 + $0xa] sm:$0x1] }
  0x24   :  { %v297_v52 = vmul.f32 %v296_v47, %v294_v39  ;;  %v298_v53 = vmul.f32 %v296_v47, %v295_v40  ;;  %v312_v57 = vstv %s797_s29  ;;  %v305_v60 = vmul.f32 %v304_v49, %v302_v45  ;;  %v343_v20 = vld [vmem:[%s953_s4 + $0x1a] sm:$0x1]  ;;  %v351_v27 = vld [vmem:[%s953_s4 + $0x1b] sm:$0x1]  ;;  %v358_v33 = vld [vmem:[%s953_s4 + $0xc] sm:$0x1] }
  0x25   :  { %v137_v35 = vadd.f32 %v135_v17, %v129_v25  ;;  %v138_v36 = vadd.f32 %v136_v18, %v130_v26  ;;  %v283_v50 = vadd.f32 %v281_v37, %v275_v41  ;;  %v284_v51 = vadd.f32 %v282_v38, %v276_v42  ;;  %v350_v26 = vld [vmem:[%s953_s4 + $0xb] sm:$0x1]  ;;  %v359_v34 = vld [vmem:[%s953_s4 + $0x1c] sm:$0x1]  ;;  %v366_v40 = vld [vmem:[%s953_s4 + $0xd] sm:$0x1] }
  0x26   :  { %v306_v61 = vmul.f32 %v304_v49, %v303_v48  ;;  %v320_v0 = vstv %s813_s0  ;;  %v313_v3 = vmul.f32 %v312_v57, %v310_v55  ;;  %v314_v4 = vmul.f32 %v312_v57, %v311_v56  ;;  %v367_v41 = vld [vmem:[%s953_s4 + $0x1d] sm:$0x1]  ;;  %v374_v47 = vld [vmem:[%s953_s4 + $0xe] sm:$0x1]  ;;  %v375_v48 = vld [vmem:[%s953_s4 + $0x1e] sm:$0x1] }
  0x27   :  { %v157_v46 = vrot.slane %v138_v36, 7  ;;  %v291_v58 = vadd.f32 %v289_v43, %v283_v50  ;;  %v292_v59 = vadd.f32 %v290_v44, %v284_v51  ;;  %v328_v7 = vstv %s823_s17  ;;  %v383_v55 = vld [vmem:[%s953_s4 + $0x1f] sm:$0x1] }
  0x28   :  { %v321_v10 = vmul.f32 %v320_v0, %v318_v62  ;;  %v322_v11 = vmul.f32 %v320_v0, %v319_v63  ;;  %v336_v14 = vstv %s833_s22  ;;  %v329_v17 = vmul.f32 %v328_v7, %v326_v5 }
  0x29   :  { %v159_v54 = vsel %vm158_vm0, %v157_v46, %v137_v35  ;;  %v299_v1 = vadd.f32 %v297_v52, %v291_v58  ;;  %v300_v2 = vadd.f32 %v298_v53, %v292_v59  ;;  %v330_v18 = vmul.f32 %v328_v7, %v327_v6 }
  0x2a   :  { %539 = vmatmul.mubr.msk.f32.vlgmr.msra.gmra.mrb[0].mxu0 %vm160_vm1, %v159_v54  ;;  %v344_v21 = vstv %s843_s28  ;;  %v337_v24 = vmul.f32 %v336_v14, %v334_v12  ;;  %v338_v25 = vmul.f32 %v336_v14, %v335_v13  ;;  %v352_v28 = vstv %s852_s12  ;;  %v382_v54 = vld [vmem:[%s953_s4 + $0xf] sm:$0x1]  ;;  %s40_s4 = sld [smem:[#allocation3]]  ;;  %v41_v13 = vld [vmem:[%s951_s2] ss:$4 sm:$0x3] }
  0x2b   :  { %v307_v8 = vadd.f32 %v305_v60, %v299_v1  ;;  %v308_v9 = vadd.f32 %v306_v61, %v300_v2  ;;  %v345_v31 = vmul.f32 %v344_v21, %v342_v19  ;;  %v346_v32 = vmul.f32 %v344_v21, %v343_v20  ;;  %v521_v19 = vld [vmem:[%s951_s2 + $0x8] ss:$4 sm:$0x3]  ;;  %v524_v20 = vld [vmem:[%s951_s2 + $0x9] ss:$4 sm:$0x3] }
  0x2c   :  { %v360_v35 = vstv %s861_s14  ;;  %v353_v38 = vmul.f32 %v352_v28, %v350_v26  ;;  %v354_v39 = vmul.f32 %v352_v28, %v351_v27  ;;  %v368_v42 = vstv %s870_s18  ;;  %s522_s18 = sld [smem:[#allocation3 + $0x1]]  ;;  %v527_v28 = vld [vmem:[%s951_s2 + $0xa] ss:$4 sm:$0x3] }
  0x2d   :  { %v315_v15 = vadd.f32 %v313_v3, %v307_v8  ;;  %v316_v16 = vadd.f32 %v314_v4, %v308_v9  ;;  %v361_v45 = vmul.f32 %v360_v35, %v358_v33  ;;  %v362_v46 = vmul.f32 %v360_v35, %v359_v34 }
  0x2e   :  { %v376_v49 = vstv %s879_s21  ;;  %v369_v52 = vmul.f32 %v368_v42, %v366_v40  ;;  %v370_v53 = vmul.f32 %v368_v42, %v367_v41  ;;  %v384_v56 = vstv %s888_s26 }
  0x2f   :  { %v323_v22 = vadd.f32 %v321_v10, %v315_v15  ;;  %v324_v23 = vadd.f32 %v322_v11, %v316_v16  ;;  %v377_v59 = vmul.f32 %v376_v49, %v374_v47  ;;  %v378_v60 = vmul.f32 %v376_v49, %v375_v48  ;;  %v523_v15 = vld [vmem:[%s951_s2 + $0x1] ss:$4 sm:$0x3] }
  0x30   :  { %v385_v63 = vmul.f32 %v384_v56, %v382_v54  ;;  %v386_v0 = vmul.f32 %v384_v56, %v383_v55  ;;  %v597_v10 = vmov 1966171168   ;;  %v240_v12 = vlaneseq }
  0x31   :  { %v331_v29 = vadd.f32 %v329_v17, %v323_v22  ;;  %v332_v30 = vadd.f32 %v330_v18, %v324_v23  ;;  %v238_v11 = vunpack.c.l.s4 %v597_v10  ;;  %v44_v14 = vstv %s40_s4  ;;  %v526_v23 = vld [vmem:[%s951_s2 + $0x2] ss:$4 sm:$0x3] }
  0x32   :  { %v52_v16 = vstv %s522_s18  ;;  %v241_v18 = vshrl.u32 %v240_v12, 7  ;;  %v45_v21 = vmul.f32 %v44_v14, %v41_v13  ;;  %v501_v56 = vstv %s950_s1 }
  0x33   :  { %v339_v36 = vadd.f32 %v337_v24, %v331_v29  ;;  %v340_v37 = vadd.f32 %v338_v25, %v332_v30  ;;  %v239_v17 = vunpack.c.0.s8 %v238_v11  ;;  %v53_v22 = vmul.f32 %v523_v15, %v52_v16 }
  0x34   :  { %v62_v24 = vstv %s525_s16  ;;  %v46_v25 = vmul.f32 %v521_v19, %v44_v14  ;;  %v54_v26 = vmul.f32 %v524_v20, %v52_v16 }
  0x35   :  { %v347_v43 = vadd.f32 %v345_v31, %v339_v36  ;;  %v348_v44 = vadd.f32 %v346_v32, %v340_v37  ;;  %v242_v27 = vsub.s32 %v239_v17, %v241_v18  ;;  %v55_v29 = vadd.f32 %v53_v22, %v45_v21  ;;  %v529_v31 = vld [vmem:[%s951_s2 + $0x3] ss:$4 sm:$0x3]  ;;  %v530_v36 = vld [vmem:[%s951_s2 + $0xb] ss:$4 sm:$0x3] }
  0x36   :  { %v63_v30 = vmul.f32 %v526_v23, %v62_v24  ;;  %v72_v32 = vstv %s528_s25  ;;  %v56_v33 = vadd.f32 %v54_v26, %v46_v25  ;;  %v64_v34 = vmul.f32 %v527_v28, %v62_v24 }
  0x37   :  { %v355_v50 = vadd.f32 %v353_v38, %v347_v43  ;;  %v356_v51 = vadd.f32 %v354_v39, %v348_v44  ;;  %v73_v38 = vmul.f32 %v529_v31, %v72_v32  ;;  %v74_v40 = vmul.f32 %v530_v36, %v72_v32 }
  0x38   :  { %v65_v37 = vadd.f32 %v63_v30, %v55_v29  ;;  %v66_v39 = vadd.f32 %v64_v34, %v56_v33 }
  0x39   :  { %v363_v57 = vadd.f32 %v361_v45, %v355_v50  ;;  %v364_v58 = vadd.f32 %v362_v46, %v356_v51 }
  0x3a   :  { %v75_v42 = vadd.f32 %v73_v38, %v65_v37  ;;  %v76_v46 = vadd.f32 %v74_v40, %v66_v39 }
  0x3b   :  { %v371_v61 = vadd.f32 %v369_v52, %v363_v57  ;;  %v372_v62 = vadd.f32 %v370_v53, %v364_v58 }
  0x3d   :  { %v379_v1 = vadd.f32 %v377_v59, %v371_v61  ;;  %v380_v2 = vadd.f32 %v378_v60, %v372_v62 }
  0x3f   :  { %v387_v3 = vadd.f32 %v385_v63, %v379_v1  ;;  %v388_v4 = vadd.f32 %v386_v0, %v380_v2 }
  0x41   :  { %v395_v5 = vrot.slane %v388_v4, 7 }
  0x43   :  { %v396_v6 = vsel %vm158_vm0, %v395_v5, %v387_v3 }
  0x44   :  { %556 = vmatmul.mubr.msk.f32.vlgmr.msra.gmra.mrb[0].mxu1 %vm397_vm2, %v396_v6 }
  0xfd   :  { %v229_v7 = vpop.f32.mrb[0].mxu0 }
  0xfe   :  { %v231_v8 = vpop.f32.mrb[1].mxu0 }
  0xff   :  { %v236_v9 = vcombine.low %v229_v7, %v231_v8 }
 0x101   :  { %v243_v35 = vrot.slane %v236_v9, %v242_v27 }
 0x103   :  { %v244_v41 = vcombine.high %v243_v35, %v243_v35  ;;  %v251_v43 = vrot.slane %v243_v35, %v242_v27 }
 0x105   :  { %v258_v47 = vrot.slane %v244_v41, %v242_v27  ;;  %v261_v49 = vadd.f32 %v251_v43, %v75_v42 }
 0x107   :  { %v262_v51 = vadd.f32 %v258_v47, %v76_v46 }
 0x117   :  { %v466_v44 = vpop.f32.mrb[0].mxu1 }
 0x118   :  { %v468_v45 = vpop.f32.mrb[1].mxu1 }
 0x119   :  { %v473_v48 = vcombine.low %v466_v44, %v468_v45 }
 0x11b   :  { %v480_v50 = vrot.slane %v473_v48, %v242_v27 }
 0x11d   :  { %v481_v52 = vcombine.high %v480_v50, %v480_v50  ;;  %v488_v53 = vrot.slane %v480_v50, %v242_v27 }
 0x11f   :  { %v495_v54 = vrot.slane %v481_v52, %v242_v27  ;;  %v498_v55 = vadd.f32 %v488_v53, %v261_v49 }
 0x121   :  { %v499_v57 = vadd.f32 %v495_v54, %v262_v51  ;;  %v502_v58 = vadd.f32 %v501_v56, %v498_v55 }
 0x123   :  { %v503_v59 = vadd.f32 %v501_v56, %v499_v57 }
 0x125   :  { %v506_v60 = vcombine.low %v502_v58, %v503_v59 }
 0x127   :  { %557 = vst.sshfl [vmem:[%s956_s7] sm:$0x33 pattern:$0x75316420] %v506_v60 }
 0x128   :  { %520 = vsyncpa [#allocation4], 1 }

</bundles_post_ra>
